<compile_context>
chip_gen: v7x
topology: tpu7x:2x2x1
jax: 0.10.0
libtpu: 0.0.40
codegen_flags: <defaults>
</compile_context>

<pallas_src>
import jax
import jax.numpy as jnp
from jax.experimental import pallas as pl
from jax.experimental.pallas import tpu as pltpu

NEG_SLOPE = 0.01  # F.leaky_relu default


def _leaky_relu(x):
    return jnp.where(x >= 0, x, NEG_SLOPE * x)


# ----------------------------- kernel -----------------------------

def _make_reward_kernel(split_l2: bool):
    """Row-wise reward MLP kernel. `split_l2` picks the v5e (128x128 MXU) layout."""
    f32 = jnp.float32
    bf16 = jnp.bfloat16

    def kernel(eef_ref, obj_ref,
               oW1_ref, ob1_ref, eW1_ref, eb1_ref,
               W2f_ref, b2f_ref, W1_ref, b1_ref,
               W2_ref, b2_ref, w3_ref, b3_ref,
               r_ref):
        # object branch, layer 1: cast f32 -> bf16 in-kernel (hidden under DMA)
        obj_h = jnp.dot(obj_ref[...].astype(bf16), oW1_ref[...],
                        preferred_element_type=f32)
        obj_h = _leaky_relu(obj_h + ob1_ref[...])

        # eef branch, layer 1 on the VPU: K=3 contraction -> three broadcast FMAs
        e = eef_ref[...]                                  # (TILE_R, 3) f32
        eef_h = (e[:, 0:1] * eW1_ref[0:1, :]
                 + e[:, 1:2] * eW1_ref[1:2, :]
                 + e[:, 2:3] * eW1_ref[2:3, :]
                 + eb1_ref[...])
        eef_h = _leaky_relu(eef_h)

        if split_l2:
            # v5e: two real 128x128 matmuls (block-diag zeros would waste half
            # the 128x128 MXU tiles) and a split fc1 contraction -> no concat.
            eef2 = jnp.dot(eef_h.astype(bf16), W2f_ref[0:128, 0:128],
                           preferred_element_type=f32)
            eef2 = _leaky_relu(eef2 + b2f_ref[:, 0:128])
            obj2 = jnp.dot(obj_h.astype(bf16), W2f_ref[128:256, 128:256],
                           preferred_element_type=f32)
            obj2 = _leaky_relu(obj2 + b2f_ref[:, 128:256])
            x = (jnp.dot(eef2.astype(bf16), W1_ref[0:128, :],
                         preferred_element_type=f32)
                 + jnp.dot(obj2.astype(bf16), W1_ref[128:256, :],
                           preferred_element_type=f32))
        else:
            # v6e/v7x: fused 256-wide block-diag layer 2 + 256-contraction fc1.
            # bf16 before the concat -> half the copied bytes.
            h = jnp.concatenate([eef_h.astype(bf16), obj_h.astype(bf16)], axis=-1)
            h2 = jnp.dot(h, W2f_ref[...], preferred_element_type=f32)
            h2 = _leaky_relu(h2 + b2f_ref[...])
            x = jnp.dot(h2.astype(bf16), W1_ref[...], preferred_element_type=f32)
        x = _leaky_relu(x + b1_ref[...])                  # fc1 bias + act

        # fc2 (128 -> 64)
        x = jnp.dot(x.astype(bf16), W2_ref[...], preferred_element_type=f32)
        x = _leaky_relu(x + b2_ref[...])

        # fc3 (64 -> 1) on VPU/XLU: multiply + lane reduce (no N=1 MXU matmul)
        r_ref[...] = (jnp.sum(x * w3_ref[...], axis=-1, keepdims=True)
                      + b3_ref[...])

    return kernel


# ----------------------------- wrapper -----------------------------

def _device_is_v5e():
    try:
        kind = jax.devices()[0].device_kind.lower()
    except Exception:
        return False
    return ("v5 lite" in kind) or ("v5e" in kind) or ("v5lite" in kind)


def _choose_tile_rows(R, target=2048):
    """Rows per tile: multiple of 8 (or the full R), as large as the target."""
    if R <= target:
        return R
    t = max(8, (target // 8) * 8)
    # prefer a big multiple-of-8 divisor of R (avoids a partial trailing block)
    for cand in range(t, max(t // 2, 8) - 1, -8):
        if R % cand == 0:
            return cand
    return t  # fall back to cdiv grid + Pallas-masked trailing block


def cum_return_pallas(eef, obj, kparams, *, target_rows=2048, split_layer2=None):
    """eef: (Btot, T, 3), obj: (Btot, T, 256) -> (sum_rewards, sum_abs_rewards), each (Btot, 1)."""
    Btot, T, _ = eef.shape
    R = Btot * T
    if split_layer2 is None:
        split_layer2 = _device_is_v5e()

    TILE_R = _choose_tile_rows(R, target_rows)
    grid = (pl.cdiv(R, TILE_R),)

    eef_flat = eef.reshape(R, 3).astype(jnp.float32)
    obj_flat = obj.reshape(R, 256).astype(jnp.float32)   # native dtype; bf16 cast in-kernel

    def _const(p):
        return pl.BlockSpec(p.shape, lambda i, n=p.ndim: (0,) * n)

    in_specs = [
        pl.BlockSpec((TILE_R, 3), lambda i: (i, 0)),      # eef rows
        pl.BlockSpec((TILE_R, 256), lambda i: (i, 0)),    # obj rows (dominant stream)
    ] + [_const(p) for p in kparams]                      # resident weights/biases

    out_specs = pl.BlockSpec((TILE_R, 1), lambda i: (i, 0))
    out_shape = jax.ShapeDtypeStruct((R, 1), jnp.float32)

    # advisory cost estimate
    flops_per_row = 2 * (256 * 128 + 3 * 128 + 2 * 128 * 128 + 256 * 128
                         + 128 * 64 + 64)
    param_bytes = sum(int(p.size) * p.dtype.itemsize for p in kparams)
    bytes_accessed = R * (256 * 4 + 3 * 4 + 4) + param_bytes

    r_flat = pl.pallas_call(
        _make_reward_kernel(split_layer2),
        out_shape=out_shape,
        grid=grid,
        in_specs=in_specs,
        out_specs=out_specs,
        compiler_params=pltpu.CompilerParams(
            dimension_semantics=("parallel",),
            vmem_limit_bytes=32 * 1024 * 1024),
        cost_estimate=pl.CostEstimate(flops=int(R * flops_per_row),
                                      transcendentals=0,
                                      bytes_accessed=int(bytes_accessed)),
    )(eef_flat, obj_flat, *kparams)

    # Tiny time-axis reduction in the wrapper (re-reads R*4 bytes, <1% of the
    # obj stream) -- replaces the HBM-sourced one-hot S matmuls entirely.
    r = r_flat.reshape(Btot, T)
    sum_rewards = jnp.sum(r, axis=1, keepdims=True)
    sum_abs_rewards = jnp.sum(jnp.abs(r), axis=1, keepdims=True)
    return sum_rewards, sum_abs_rewards


def forward_pallas(ee_i, obj_i, ee_j, obj_j, kparams):
    """Returns (logits (B,2), abs_rewards (B,1)) like RewardNetPointCloudEEF.forward."""
    B = ee_i.shape[0]
    eef = jnp.concatenate([ee_i, ee_j], axis=0)     # (2B, T, 3)
    obj = jnp.concatenate([obj_i, obj_j], axis=0)   # (2B, T, 256)
    sum_r, sum_abs = cum_return_pallas(eef, obj, kparams)
    logits = jnp.concatenate([sum_r[:B], sum_r[B:]], axis=1)   # (B, 2)
    abs_rewards = sum_abs[:B] + sum_abs[B:]                    # (B, 1)
    return logits, abs_rewards


# ---------------- deterministic parameter construction ----------------

def _init_linear(key, fan_in, fan_out):
    kw, kb = jax.random.split(key)
    bound = 1.0 / (fan_in ** 0.5)
    W = jax.random.uniform(kw, (fan_in, fan_out), jnp.float32, -bound, bound)
    b = jax.random.uniform(kb, (1, fan_out), jnp.float32, -bound, bound)
    return W, b


def make_params(key):
    ks = jax.random.split(key, 7)
    obj_W1, obj_b1 = _init_linear(ks[0], 256, 128)
    obj_W2, obj_b2 = _init_linear(ks[1], 128, 128)
    eef_W1, eef_b1 = _init_linear(ks[2], 3, 128)
    eef_W2, eef_b2 = _init_linear(ks[3], 128, 128)
    W1, b1 = _init_linear(ks[4], 256, 128)
    W2, b2 = _init_linear(ks[5], 128, 64)
    W3, b3 = _init_linear(ks[6], 64, 1)

    bf16 = jnp.bfloat16
    oW1_bf, eW2_bf, oW2_bf = obj_W1.astype(bf16), eef_W2.astype(bf16), obj_W2.astype(bf16)
    W1_bf, W2_bf = W1.astype(bf16), W2.astype(bf16)

    # Block-diagonal layer-2 weight: [0:128,0:128]=eef_fc2, [128:,128:]=obj_fc2.
    # The fused (v6e/v7x) path uses it whole; the split (v5e) path slices the
    # two real 128x128 corners out of it in-kernel.
    W2f = jnp.zeros((256, 256), bf16).at[:128, :128].set(eW2_bf).at[128:, 128:].set(oW2_bf)
    b2f = jnp.concatenate([eef_b2, obj_b2], axis=1)            # (1, 256) f32

    kparams = (oW1_bf, obj_b1,          # obj layer 1
               eef_W1, eef_b1,          # eef layer 1 (VPU, f32, (3,128))
               W2f, b2f,                # layer 2 (fused block-diag / sliced)
               W1_bf, b1,               # fc1
               W2_bf, b2,               # fc2
               W3.T, b3)                # fc3 as (1,64) row + (1,1) bias

    # reference uses the bf16-rounded weight values (in f32) so only activation
    # rounding differs between kernel and reference
    raw = dict(obj_W1=oW1_bf.astype(jnp.float32), obj_b1=obj_b1,
               obj_W2=oW2_bf.astype(jnp.float32), obj_b2=obj_b2,
               eef_W1=eef_W1, eef_b1=eef_b1,
               eef_W2=eW2_bf.astype(jnp.float32), eef_b2=eef_b2,
               W1=W1_bf.astype(jnp.float32), b1=b1,
               W2=W2_bf.astype(jnp.float32), b2=b2,
               W3=W3, b3=b3)
    return kparams, raw


# ---------------- pure-JAX reference (correctness check) ----------------

def _ref_cum_return(eef, obj, p):
    o = _leaky_relu(obj @ p["obj_W1"] + p["obj_b1"])
    o = _leaky_relu(o @ p["obj_W2"] + p["obj_b2"])
    e = _leaky_relu(eef @ p["eef_W1"] + p["eef_b1"])
    e = _leaky_relu(e @ p["eef_W2"] + p["eef_b2"])
    x = jnp.concatenate([e, o], axis=-1)
    x = _leaky_relu(x @ p["W1"] + p["b1"])
    x = _leaky_relu(x @ p["W2"] + p["b2"])
    r = x @ p["W3"] + p["b3"]
    return jnp.sum(r, axis=1), jnp.sum(jnp.abs(r), axis=1)


def _ref_forward(ee_i, obj_i, ee_j, obj_j, p):
    ci, ai = _ref_cum_return(ee_i, obj_i, p)
    cj, aj = _ref_cum_return(ee_j, obj_j, p)
    return jnp.concatenate([ci, cj], axis=1), ai + aj


if __name__ == "__main__":
    key = jax.random.PRNGKey(0)
    kp, kd = jax.random.split(key)
    kparams, raw = make_params(kp)

    B, T = 2, 8
    kd = jax.random.split(kd, 4)
    ee_traj_i = jax.random.normal(kd[0], (B, T, 3), jnp.float32)
    obj_emb_i = jax.random.normal(kd[1], (B, T, 256), jnp.float32)
    ee_traj_j = jax.random.normal(kd[2], (B, T, 3), jnp.float32)
    obj_emb_j = jax.random.normal(kd[3], (B, T, 256), jnp.float32)

    logits, abs_rewards = jax.jit(forward_pallas)(
        ee_traj_i, obj_emb_i, ee_traj_j, obj_emb_j, kparams)
    jax.block_until_ready((logits, abs_rewards))

    ref_logits, ref_abs = _ref_forward(ee_traj_i, obj_emb_i, ee_traj_j, obj_emb_j, raw)
    assert logits.shape == (B, 2) and abs_rewards.shape == (B, 1)
    # bf16 matmul operands (f32 accumulation) -> loosened tolerance vs f32 reference
    assert jnp.allclose(logits, ref_logits, atol=2e-2, rtol=2e-2)
    assert jnp.allclose(abs_rewards, ref_abs, atol=2e-2, rtol=2e-2)

    print("KERNEL_OK")
</pallas_src>

<mosaic_0001>
module attributes {stable_mosaic.version = 11 : i64} {
  func.func @kernel(%arg0: i32, %arg1: memref<32x3xf32, #tpu.memory_space<vmem>>, %arg2: memref<32x256xf32, #tpu.memory_space<vmem>>, %arg3: memref<256x128xbf16, #tpu.memory_space<vmem>>, %arg4: memref<1x128xf32, #tpu.memory_space<vmem>>, %arg5: memref<3x128xf32, #tpu.memory_space<vmem>>, %arg6: memref<1x128xf32, #tpu.memory_space<vmem>>, %arg7: memref<256x256xbf16, #tpu.memory_space<vmem>>, %arg8: memref<1x256xf32, #tpu.memory_space<vmem>>, %arg9: memref<256x128xbf16, #tpu.memory_space<vmem>>, %arg10: memref<1x128xf32, #tpu.memory_space<vmem>>, %arg11: memref<128x64xbf16, #tpu.memory_space<vmem>>, %arg12: memref<1x64xf32, #tpu.memory_space<vmem>>, %arg13: memref<1x64xf32, #tpu.memory_space<vmem>>, %arg14: memref<1x1xf32, #tpu.memory_space<vmem>>, %arg15: memref<32x1xf32, #tpu.memory_space<vmem>>) attributes {dimension_semantics = [#tpu.dimension_semantics<parallel>], iteration_bounds = array<i64: 1>, scalar_prefetch = 0 : i64, scratch_operands = 0 : i64, tpu.core_type = #tpu.core_type<tc>, window_params = [{transform_indices = @transform_0, window_bounds = array<i64: 32, 3>}, {transform_indices = @transform_1, window_bounds = array<i64: 32, 256>}, {pipeline_mode = #tpu.pipeline_mode<synchronous>, transform_indices = @transform_2, window_bounds = array<i64: 256, 128>}, {pipeline_mode = #tpu.pipeline_mode<synchronous>, transform_indices = @transform_3, window_bounds = array<i64: 1, 128>}, {pipeline_mode = #tpu.pipeline_mode<synchronous>, transform_indices = @transform_4, window_bounds = array<i64: 3, 128>}, {pipeline_mode = #tpu.pipeline_mode<synchronous>, transform_indices = @transform_5, window_bounds = array<i64: 1, 128>}, {pipeline_mode = #tpu.pipeline_mode<synchronous>, transform_indices = @transform_6, window_bounds = array<i64: 256, 256>}, {pipeline_mode = #tpu.pipeline_mode<synchronous>, transform_indices = @transform_7, window_bounds = array<i64: 1, 256>}, {pipeline_mode = #tpu.pipeline_mode<synchronous>, transform_indices = @transform_8, window_bounds = array<i64: 256, 128>}, {pipeline_mode = #tpu.pipeline_mode<synchronous>, transform_indices = @transform_9, window_bounds = array<i64: 1, 128>}, {pipeline_mode = #tpu.pipeline_mode<synchronous>, transform_indices = @transform_10, window_bounds = array<i64: 128, 64>}, {pipeline_mode = #tpu.pipeline_mode<synchronous>, transform_indices = @transform_11, window_bounds = array<i64: 1, 64>}, {pipeline_mode = #tpu.pipeline_mode<synchronous>, transform_indices = @transform_12, window_bounds = array<i64: 1, 64>}, {pipeline_mode = #tpu.pipeline_mode<synchronous>, transform_indices = @transform_13, window_bounds = array<i64: 1, 1>}, {transform_indices = @transform_14, window_bounds = array<i64: 32, 1>}]} {
    %c0 = arith.constant 0 : index
    %c0_0 = arith.constant 0 : index
    %0 = vector.load %arg2[%c0, %c0_0] : memref<32x256xf32, #tpu.memory_space<vmem>>, vector<32x256xf32>
    %1 = arith.truncf %0 : vector<32x256xf32> to vector<32x256xbf16>
    %c0_1 = arith.constant 0 : index
    %c0_2 = arith.constant 0 : index
    %2 = vector.load %arg3[%c0_1, %c0_2] : memref<256x128xbf16, #tpu.memory_space<vmem>>, vector<256x128xbf16>
    %cst = arith.constant dense<0.000000e+00> : vector<32x128xf32>
    %3 = tpu.matmul %1, %2, %cst {dimension_numbers = #tpu.dot_dimension_numbers<[1], [0], [0], [1], [0, 0, 1, 1], [], []>} : vector<32x256xbf16>, vector<256x128xbf16>, vector<32x128xf32> -> vector<32x128xf32>
    %c0_3 = arith.constant 0 : index
    %c0_4 = arith.constant 0 : index
    %4 = vector.load %arg4[%c0_3, %c0_4] : memref<1x128xf32, #tpu.memory_space<vmem>>, vector<1x128xf32>
    %5 = vector.broadcast %4 : vector<1x128xf32> to vector<32x128xf32>
    %6 = arith.addf %3, %5 : vector<32x128xf32>
    %cst_5 = arith.constant 0.000000e+00 : f32
    %7 = vector.broadcast %cst_5 : f32 to vector<32x128xf32>
    %8 = arith.cmpf oge, %6, %7 : vector<32x128xf32>
    %cst_6 = arith.constant 0.00999999977 : f32
    %9 = vector.broadcast %cst_6 : f32 to vector<32x128xf32>
    %10 = arith.mulf %9, %6 : vector<32x128xf32>
    %11 = arith.select %8, %6, %10 : vector<32x128xi1>, vector<32x128xf32>
    %c0_7 = arith.constant 0 : index
    %c0_8 = arith.constant 0 : index
    %12 = vector.load %arg1[%c0_7, %c0_8] : memref<32x3xf32, #tpu.memory_space<vmem>>, vector<32x3xf32>
    %13 = vector.extract_strided_slice %12 {offsets = [0, 0], sizes = [32, 1], strides = [1, 1]} : vector<32x3xf32> to vector<32x1xf32>
    %c0_9 = arith.constant 0 : index
    %c0_10 = arith.constant 0 : index
    %14 = vector.load %arg5[%c0_9, %c0_10] : memref<3x128xf32, #tpu.memory_space<vmem>>, vector<1x128xf32>
    %15 = vector.broadcast %13 : vector<32x1xf32> to vector<32x128xf32>
    %16 = vector.broadcast %14 : vector<1x128xf32> to vector<32x128xf32>
    %17 = arith.mulf %15, %16 : vector<32x128xf32>
    %18 = vector.extract_strided_slice %12 {offsets = [0, 1], sizes = [32, 1], strides = [1, 1]} : vector<32x3xf32> to vector<32x1xf32>
    %c1 = arith.constant 1 : index
    %c0_11 = arith.constant 0 : index
    %19 = vector.load %arg5[%c1, %c0_11] : memref<3x128xf32, #tpu.memory_space<vmem>>, vector<1x128xf32>
    %20 = vector.broadcast %18 : vector<32x1xf32> to vector<32x128xf32>
    %21 = vector.broadcast %19 : vector<1x128xf32> to vector<32x128xf32>
    %22 = arith.mulf %20, %21 : vector<32x128xf32>
    %23 = arith.addf %17, %22 : vector<32x128xf32>
    %24 = vector.extract_strided_slice %12 {offsets = [0, 2], sizes = [32, 1], strides = [1, 1]} : vector<32x3xf32> to vector<32x1xf32>
    %c2 = arith.constant 2 : index
    %c0_12 = arith.constant 0 : index
    %25 = vector.load %arg5[%c2, %c0_12] : memref<3x128xf32, #tpu.memory_space<vmem>>, vector<1x128xf32>
    %26 = vector.broadcast %24 : vector<32x1xf32> to vector<32x128xf32>
    %27 = vector.broadcast %25 : vector<1x128xf32> to vector<32x128xf32>
    %28 = arith.mulf %26, %27 : vector<32x128xf32>
    %29 = arith.addf %23, %28 : vector<32x128xf32>
    %c0_13 = arith.constant 0 : index
    %c0_14 = arith.constant 0 : index
    %30 = vector.load %arg6[%c0_13, %c0_14] : memref<1x128xf32, #tpu.memory_space<vmem>>, vector<1x128xf32>
    %31 = vector.broadcast %30 : vector<1x128xf32> to vector<32x128xf32>
    %32 = arith.addf %29, %31 : vector<32x128xf32>
    %cst_15 = arith.constant 0.000000e+00 : f32
    %33 = vector.broadcast %cst_15 : f32 to vector<32x128xf32>
    %34 = arith.cmpf oge, %32, %33 : vector<32x128xf32>
    %cst_16 = arith.constant 0.00999999977 : f32
    %35 = vector.broadcast %cst_16 : f32 to vector<32x128xf32>
    %36 = arith.mulf %35, %32 : vector<32x128xf32>
    %37 = arith.select %34, %32, %36 : vector<32x128xi1>, vector<32x128xf32>
    %38 = arith.truncf %37 : vector<32x128xf32> to vector<32x128xbf16>
    %39 = arith.truncf %11 : vector<32x128xf32> to vector<32x128xbf16>
    %40 = tpu.concatenate %38, %39 in 1 : vector<32x128xbf16>, vector<32x128xbf16> -> vector<32x256xbf16>
    %c0_17 = arith.constant 0 : index
    %c0_18 = arith.constant 0 : index
    %41 = vector.load %arg7[%c0_17, %c0_18] : memref<256x256xbf16, #tpu.memory_space<vmem>>, vector<256x256xbf16>
    %cst_19 = arith.constant dense<0.000000e+00> : vector<32x256xf32>
    %42 = tpu.matmul %40, %41, %cst_19 {dimension_numbers = #tpu.dot_dimension_numbers<[1], [0], [0], [1], [0, 0, 1, 1], [], []>} : vector<32x256xbf16>, vector<256x256xbf16>, vector<32x256xf32> -> vector<32x256xf32>
    %c0_20 = arith.constant 0 : index
    %c0_21 = arith.constant 0 : index
    %43 = vector.load %arg8[%c0_20, %c0_21] : memref<1x256xf32, #tpu.memory_space<vmem>>, vector<1x256xf32>
    %44 = vector.broadcast %43 : vector<1x256xf32> to vector<32x256xf32>
    %45 = arith.addf %42, %44 : vector<32x256xf32>
    %cst_22 = arith.constant 0.000000e+00 : f32
    %46 = vector.broadcast %cst_22 : f32 to vector<32x256xf32>
    %47 = arith.cmpf oge, %45, %46 : vector<32x256xf32>
    %cst_23 = arith.constant 0.00999999977 : f32
    %48 = vector.broadcast %cst_23 : f32 to vector<32x256xf32>
    %49 = arith.mulf %48, %45 : vector<32x256xf32>
    %50 = arith.select %47, %45, %49 : vector<32x256xi1>, vector<32x256xf32>
    %51 = arith.truncf %50 : vector<32x256xf32> to vector<32x256xbf16>
    %c0_24 = arith.constant 0 : index
    %c0_25 = arith.constant 0 : index
    %52 = vector.load %arg9[%c0_24, %c0_25] : memref<256x128xbf16, #tpu.memory_space<vmem>>, vector<256x128xbf16>
    %cst_26 = arith.constant dense<0.000000e+00> : vector<32x128xf32>
    %53 = tpu.matmul %51, %52, %cst_26 {dimension_numbers = #tpu.dot_dimension_numbers<[1], [0], [0], [1], [0, 0, 1, 1], [], []>} : vector<32x256xbf16>, vector<256x128xbf16>, vector<32x128xf32> -> vector<32x128xf32>
    %c0_27 = arith.constant 0 : index
    %c0_28 = arith.constant 0 : index
    %54 = vector.load %arg10[%c0_27, %c0_28] : memref<1x128xf32, #tpu.memory_space<vmem>>, vector<1x128xf32>
    %55 = vector.broadcast %54 : vector<1x128xf32> to vector<32x128xf32>
    %56 = arith.addf %53, %55 : vector<32x128xf32>
    %cst_29 = arith.constant 0.000000e+00 : f32
    %57 = vector.broadcast %cst_29 : f32 to vector<32x128xf32>
    %58 = arith.cmpf oge, %56, %57 : vector<32x128xf32>
    %cst_30 = arith.constant 0.00999999977 : f32
    %59 = vector.broadcast %cst_30 : f32 to vector<32x128xf32>
    %60 = arith.mulf %59, %56 : vector<32x128xf32>
    %61 = arith.select %58, %56, %60 : vector<32x128xi1>, vector<32x128xf32>
    %62 = arith.truncf %61 : vector<32x128xf32> to vector<32x128xbf16>
    %c0_31 = arith.constant 0 : index
    %c0_32 = arith.constant 0 : index
    %63 = vector.load %arg11[%c0_31, %c0_32] : memref<128x64xbf16, #tpu.memory_space<vmem>>, vector<128x64xbf16>
    %cst_33 = arith.constant dense<0.000000e+00> : vector<32x64xf32>
    %64 = tpu.matmul %62, %63, %cst_33 {dimension_numbers = #tpu.dot_dimension_numbers<[1], [0], [0], [1], [0, 0, 1, 1], [], []>} : vector<32x128xbf16>, vector<128x64xbf16>, vector<32x64xf32> -> vector<32x64xf32>
    %c0_34 = arith.constant 0 : index
    %c0_35 = arith.constant 0 : index
    %65 = vector.load %arg12[%c0_34, %c0_35] : memref<1x64xf32, #tpu.memory_space<vmem>>, vector<1x64xf32>
    %66 = vector.broadcast %65 : vector<1x64xf32> to vector<32x64xf32>
    %67 = arith.addf %64, %66 : vector<32x64xf32>
    %cst_36 = arith.constant 0.000000e+00 : f32
    %68 = vector.broadcast %cst_36 : f32 to vector<32x64xf32>
    %69 = arith.cmpf oge, %67, %68 : vector<32x64xf32>
    %cst_37 = arith.constant 0.00999999977 : f32
    %70 = vector.broadcast %cst_37 : f32 to vector<32x64xf32>
    %71 = arith.mulf %70, %67 : vector<32x64xf32>
    %72 = arith.select %69, %67, %71 : vector<32x64xi1>, vector<32x64xf32>
    %c0_38 = arith.constant 0 : index
    %c0_39 = arith.constant 0 : index
    %73 = vector.load %arg13[%c0_38, %c0_39] : memref<1x64xf32, #tpu.memory_space<vmem>>, vector<1x64xf32>
    %74 = vector.broadcast %73 : vector<1x64xf32> to vector<32x64xf32>
    %75 = arith.mulf %72, %74 : vector<32x64xf32>
    %cst_40 = arith.constant dense<0.000000e+00> : vector<32xf32>
    %76 = vector.multi_reduction <add>, %75, %cst_40 [1] : vector<32x64xf32> to vector<32xf32>
    %77 = vector.shape_cast %76 : vector<32xf32> to vector<32x1xf32>
    %c0_41 = arith.constant 0 : index
    %c0_42 = arith.constant 0 : index
    %78 = vector.load %arg14[%c0_41, %c0_42] : memref<1x1xf32, #tpu.memory_space<vmem>>, vector<1x1xf32>
    %79 = vector.broadcast %78 : vector<1x1xf32> to vector<32x1xf32>
    %80 = arith.addf %77, %79 : vector<32x1xf32>
    %c0_43 = arith.constant 0 : index
    %c0_44 = arith.constant 0 : index
    %81 = vector.load %arg15[%c0_43, %c0_44] : memref<32x1xf32, #tpu.memory_space<vmem>>, vector<32x1xf32>
    tpu.vector_store %arg15[%c0_43, %c0_44], %80 {strides = array<i32>} : memref<32x1xf32, #tpu.memory_space<vmem>>, vector<32x1xf32>,
    return
  }
  func.func @transform_0(%arg0: i32) -> (i32, i32) {
    %c0_i32 = arith.constant 0 : i32
    %c0_i32_0 = arith.constant 0 : i32
    return %arg0, %c0_i32 : i32, i32
  }
  func.func @transform_1(%arg0: i32) -> (i32, i32) {
    %c0_i32 = arith.constant 0 : i32
    %c0_i32_0 = arith.constant 0 : i32
    return %arg0, %c0_i32 : i32, i32
  }
  func.func @transform_2(%arg0: i32) -> (i32, i32) {
    %c0_i32 = arith.constant 0 : i32
    %c0_i32_0 = arith.constant 0 : i32
    %c0_i32_1 = arith.constant 0 : i32
    return %c0_i32, %c0_i32_0 : i32, i32
  }
  func.func @transform_3(%arg0: i32) -> (i32, i32) {
    %c0_i32 = arith.constant 0 : i32
    %c0_i32_0 = arith.constant 0 : i32
    %c0_i32_1 = arith.constant 0 : i32
    return %c0_i32, %c0_i32_0 : i32, i32
  }
  func.func @transform_4(%arg0: i32) -> (i32, i32) {
    %c0_i32 = arith.constant 0 : i32
    %c0_i32_0 = arith.constant 0 : i32
    %c0_i32_1 = arith.constant 0 : i32
    return %c0_i32, %c0_i32_0 : i32, i32
  }
  func.func @transform_5(%arg0: i32) -> (i32, i32) {
    %c0_i32 = arith.constant 0 : i32
    %c0_i32_0 = arith.constant 0 : i32
    %c0_i32_1 = arith.constant 0 : i32
    return %c0_i32, %c0_i32_0 : i32, i32
  }
  func.func @transform_6(%arg0: i32) -> (i32, i32) {
    %c0_i32 = arith.constant 0 : i32
    %c0_i32_0 = arith.constant 0 : i32
    %c0_i32_1 = arith.constant 0 : i32
    return %c0_i32, %c0_i32_0 : i32, i32
  }
  func.func @transform_7(%arg0: i32) -> (i32, i32) {
    %c0_i32 = arith.constant 0 : i32
    %c0_i32_0 = arith.constant 0 : i32
    %c0_i32_1 = arith.constant 0 : i32
    return %c0_i32, %c0_i32_0 : i32, i32
  }
  func.func @transform_8(%arg0: i32) -> (i32, i32) {
    %c0_i32 = arith.constant 0 : i32
    %c0_i32_0 = arith.constant 0 : i32
    %c0_i32_1 = arith.constant 0 : i32
    return %c0_i32, %c0_i32_0 : i32, i32
  }
  func.func @transform_9(%arg0: i32) -> (i32, i32) {
    %c0_i32 = arith.constant 0 : i32
    %c0_i32_0 = arith.constant 0 : i32
    %c0_i32_1 = arith.constant 0 : i32
    return %c0_i32, %c0_i32_0 : i32, i32
  }
  func.func @transform_10(%arg0: i32) -> (i32, i32) {
    %c0_i32 = arith.constant 0 : i32
    %c0_i32_0 = arith.constant 0 : i32
    %c0_i32_1 = arith.constant 0 : i32
    return %c0_i32, %c0_i32_0 : i32, i32
  }
  func.func @transform_11(%arg0: i32) -> (i32, i32) {
    %c0_i32 = arith.constant 0 : i32
    %c0_i32_0 = arith.constant 0 : i32
    %c0_i32_1 = arith.constant 0 : i32
    return %c0_i32, %c0_i32_0 : i32, i32
  }
  func.func @transform_12(%arg0: i32) -> (i32, i32) {
    %c0_i32 = arith.constant 0 : i32
    %c0_i32_0 = arith.constant 0 : i32
    %c0_i32_1 = arith.constant 0 : i32
    return %c0_i32, %c0_i32_0 : i32, i32
  }
  func.func @transform_13(%arg0: i32) -> (i32, i32) {
    %c0_i32 = arith.constant 0 : i32
    %c0_i32_0 = arith.constant 0 : i32
    %c0_i32_1 = arith.constant 0 : i32
    return %c0_i32, %c0_i32_0 : i32, i32
  }
  func.func @transform_14(%arg0: i32) -> (i32, i32) {
    %c0_i32 = arith.constant 0 : i32
    %c0_i32_0 = arith.constant 0 : i32
    return %arg0, %c0_i32 : i32, i32
  }
}

</mosaic_0001>

<bundles_post_ra>
// kernel: forward_pallas.1
= control target key start
LH: loop header
LB: loop body
LE: loop exit
PB: predicated region body
PF: predicated region fallthrough
CT: control target
= control target key end

     0   :  { %s1693_s0 = inlined_call_operand.vmem [shape: f32[32,3], index: 0, kind: input, shape index: {}]   ;;  %s1694_s1 = inlined_call_operand.vmem [shape: f32[32,256], index: 1, kind: input, shape index: {}]   ;;  %s1695_s2 = inlined_call_operand.hbm [shape: bf16[256,128], index: 2, kind: input, shape index: {}]   ;;  %s1696_s3 = inlined_call_operand.vmem [shape: f32[1,128], index: 3, kind: input, shape index: {}]   ;;  %s1697_s4 = inlined_call_operand.vmem [shape: f32[3,128], index: 4, kind: input, shape index: {}]   ;;  %s1698_s5 = inlined_call_operand.vmem [shape: f32[1,128], index: 5, kind: input, shape index: {}]   ;;  %s1699_s6 = inlined_call_operand.vmem [shape: bf16[256,256], index: 6, kind: input, shape index: {}]   ;;  %s1700_s7 = inlined_call_operand.vmem [shape: f32[1,256], index: 7, kind: input, shape index: {}]   ;;  %s1701_s8 = inlined_call_operand.hbm [shape: bf16[256,128], index: 8, kind: input, shape index: {}]   ;;  %s1702_s9 = inlined_call_operand.vmem [shape: f32[1,128], index: 9, kind: input, shape index: {}]   ;;  %s1703_s10 = inlined_call_operand.vmem [shape: bf16[128,64], index: 10, kind: input, shape index: {}]   ;;  %s1704_s11 = inlined_call_operand.vmem [shape: f32[1,64], index: 11, kind: input, shape index: {}]   ;;  %s1705_s12 = inlined_call_operand.vmem [shape: f32[1,64], index: 12, kind: input, shape index: {}]   ;;  %s1706_s13 = inlined_call_operand.<no memory space> [shape: f32[1,1], index: 13, kind: input, shape index: {}]   ;;  %s1707_s14 = inlined_call_operand.vmem [shape: f32[32,1], index: 14, kind: output, shape index: {}]  }
   0x1   :  { %v19_v0 = vstv %s1706_s13 }
   0x2   :  { %20 = vst [vmem:[#allocation2] sm:$0x1] %v19_v0 }
   0x3   :  { %21 = vsyncpa [#allocation4], 0 }
   0x4   :  { %22 = vsyncpa [#allocation6], 0  ;;  %s1384_s15 = smov [#allocation3]   ;;  %s1336_s19 = scalar_lea.hbm %s1695_s2, 2048 }
   0x5   :  { %s32_s16 = sshll.u32 %s1384_s15, 4  ;;  %p1337_p0 = scmp.ne.s32.totalorder %s1695_s2, %s1336_s19  ;;  %s33_s16 = int_to_ptr.vmem [resolvable:$true] %s32_s16 }
   0x6   :  { %p1340_p1 = scmp.lt.u32.totalorder %s1336_s19, %s1695_s2 }
   0x8   :  { %p1342_p2 = pnand %p1340_p1, %p1337_p0 }
   0xa   :  { %1345 = shalt.err (!%p1342_p2)
}
   0xb   :  { %s1346_s13 = scalar_lea.vmem %s33_s16, 2048  ;;  %p1351_p4 = scmp.lt.s32.totalorder %s33_s16, %s33_s16 }
   0xc   :  { %p1347_p3 = scmp.ne.s32.totalorder %s33_s16, %s1346_s13  ;;  %p1352_p5 = scmp.lt.s32.totalorder %s1346_s13, %s1346_s13 }
   0xe   :  { %p1353_p6 = por %p1352_p5, %p1351_p4 }
  0x10   :  { %p1354_p7 = pnand %p1353_p6, %p1347_p3 }
  0x12   :  { %1357 = shalt.err (!%p1354_p7)
}
  0x13   :  { %s1385_s24 = smov 64   ;;  %s1386_s25 = smov 4  }
  0x14   :  { %38 = dma.hbm_to_vmem [thread:$0]  %s1695_s2, 2048, %s33_s16, [#allocation4], %s1385_s24, %s1385_s24, %s1386_s25  }
  0x15   :  { %s1387_s28 = smov [#allocation5]   ;;  %s1358_s17 = scalar_lea.hbm %s1701_s8, 2048 }
  0x16   :  { %s54_s29 = sshll.u32 %s1387_s28, 4  ;;  %p1359_p8 = scmp.ne.s32.totalorder %s1701_s8, %s1358_s17  ;;  %s55_s29 = int_to_ptr.vmem [resolvable:$true] %s54_s29 }
  0x17   :  { %p1362_p9 = scmp.lt.u32.totalorder %s1358_s17, %s1701_s8 }
  0x19   :  { %p1364_p10 = pnand %p1362_p9, %p1359_p8 }
  0x1b   :  { %1367 = shalt.err (!%p1364_p10)
}
  0x1c   :  { %s1368_s22 = scalar_lea.vmem %s55_s29, 2048  ;;  %p1373_p12 = scmp.lt.s32.totalorder %s55_s29, %s55_s29 }
  0x1d   :  { %p1369_p11 = scmp.ne.s32.totalorder %s55_s29, %s1368_s22  ;;  %p1374_p13 = scmp.lt.s32.totalorder %s1368_s22, %s1368_s22 }
  0x1f   :  { %p1375_p0 = por %p1374_p13, %p1373_p12 }
  0x21   :  { %p1376_p1 = pnand %p1375_p0, %p1369_p11 }
  0x23   :  { %1379 = shalt.err (!%p1376_p1)
}
  0x24   :  { %60 = dma.hbm_to_vmem [thread:$0]  %s1701_s8, 2048, %s55_s29, [#allocation6], %s1385_s24, %s1385_s24, %s1386_s25  }
  0x25   :  { %1380 = dma.done.wait [#allocation4], 2048  }
  0x26   :  { %1381 = vsyncadd [#allocation4], 4294965248 }
  0x27   :  { %1382 = dma.done.wait [#allocation6], 2048  }
  0x28   :  { %1383 = vsyncadd [#allocation6], 4294965248  ;;  %v1388_v1 = vmov 1   ;;  %v1389_v2 = vmov 0   ;;  %v1248_v3 = vld [vmem:[#allocation3 + $0x40] sm:$0xff]   ;;  %v1250_v5 = vld [vmem:[#allocation3 + $0x48] sm:$0xff]  }
  0x29   :  { %1240 = vset.pattern.permute.xlu1 %v1388_v1  ;;  %1239 = vset.pattern.permute.xlu0 %v1389_v2  ;;  %v1249_v4 = vld [vmem:[#allocation3] sm:$0xff]   ;;  %v1251_v6 = vld [vmem:[#allocation3 + $0x8] sm:$0xff]   ;;  %v1252_v7 = vld [vmem:[#allocation3 + $0x50] sm:$0xff]   ;;  %v1390_v27 = vmov 2  }
  0x2a   :  { %1146 = vmatprep.subr.bf16.mxu0 %v1248_v3  ;;  %v1253_v8 = vld [vmem:[#allocation3 + $0x10] sm:$0xff]   ;;  %v1254_v9 = vld [vmem:[#allocation3 + $0x58] sm:$0xff]   ;;  %v1256_v11 = vld [vmem:[#allocation3 + $0x60] sm:$0xff]  }
  0x2b   :  { %1147 = vmatpush3.bf16.msra.mxu0 %v1249_v4  ;;  %v1255_v10 = vld [vmem:[#allocation3 + $0x18] sm:$0xff]   ;;  %v1257_v12 = vld [vmem:[#allocation3 + $0x20] sm:$0xff]   ;;  %v1258_v13 = vld [vmem:[#allocation3 + $0x68] sm:$0xff]  }
  0x2c   :  { %1148 = vmatprep.subr.bf16.mxu0 %v1250_v5  ;;  %v79_v14 = vld [vmem:[%s1694_s1 + $0x8] sm:$0xff]  ;;  %v81_v15 = vld [vmem:[%s1694_s1 + $0x18] sm:$0xff]  ;;  %v286_v17 = vld [vmem:[%s1693_s0] sm:$0xff] }
  0x2d   :  { %v87_v16 = vpack.c.bf16 %v81_v15, %v79_v14  ;;  %v1259_v18 = vld [vmem:[#allocation3 + $0x28] sm:$0xff]   ;;  %v1260_v19 = vld [vmem:[#allocation3 + $0x70] sm:$0xff]   ;;  %321 = vperm.xlu1 %1240, %v286_v17   ;;  %293 = vperm.xlu0 %1239, %v286_v17   ;;  %v1262_v26 = vld [vmem:[#allocation3 + $0x78] sm:$0xff]  }
  0x2e   :  { %v287_v20 = vld [vmem:[%s1693_s0 + $0x8] sm:$0xff]  ;;  %v1267_v23 = vld [vmem:[%s1699_s6 + $0x14] ss:$8 sps:$4 sm:$0xff]   ;;  %v1269_v25 = vld [vmem:[%s1699_s6 + $0x10] ss:$8 sps:$4 sm:$0xff]  }
  0x2f   :  { %1149 = vmatpush3.bf16.msra.mxu0 %v1251_v6  ;;  %257 = vmatprep.mubr.bf16.mxu0 %v87_v16  ;;  %v1264_v21 = vld [vmem:[%s1699_s6 + $0x4] ss:$8 sps:$4 sm:$0xff]   ;;  %v1266_v22 = vld [vmem:[%s1699_s6] ss:$8 sps:$4 sm:$0xff]   ;;  %v1261_v24 = vld [vmem:[#allocation3 + $0x30] sm:$0xff]  }
  0x30   :  { %1150 = vmatprep.subr.bf16.mxu0 %v1252_v7  ;;  %608 = vmatprep.subr.bf16.mxu1 %v1264_v21  ;;  %v1270_v28 = vld [vmem:[%s1699_s6 + $0x24] ss:$8 sps:$4 sm:$0xff]   ;;  %v1263_v29 = vld [vmem:[#allocation3 + $0x38] sm:$0xff]   ;;  %v80_v31 = vld [vmem:[%s1694_s1 + $0x10] sm:$0xff] }
  0x31   :  { %609 = vmatpush1.bf16.msra.mxu1 %v1266_v22  ;;  %325 = vperm.xlu1 %1240, %v287_v20   ;;  %v78_v30 = vld [vmem:[%s1694_s1] sm:$0xff]  ;;  %v83_v32 = vld [vmem:[%s1694_s1 + $0x28] sm:$0xff]  ;;  %v85_v33 = vld [vmem:[%s1694_s1 + $0x38] sm:$0xff] }
  0x32   :  { %1241 = vset.pattern.permute.xlu0 %v1390_v27  ;;  %610 = vmatprep.subr.bf16.mxu1 %v1267_v23  ;;  %v1272_v34 = vld [vmem:[%s1699_s6 + $0x20] ss:$8 sps:$4 sm:$0xff]   ;;  %v1273_v35 = vld [vmem:[%s1699_s6 + $0x34] ss:$8 sps:$4 sm:$0xff]   ;;  %v86_v36 = vpack.c.bf16 %v80_v31, %v78_v30  ;;  %v89_v39 = vpack.c.bf16 %v85_v33, %v83_v32  ;;  %v1275_v40 = vld [vmem:[%s1699_s6 + $0x30] ss:$8 sps:$4 sm:$0xff]  }
  0x33   :  { %1151 = vmatpush3.bf16.msra.mxu0 %v1253_v8  ;;  %350 = vperm.xlu0 %1241, %v286_v17   ;;  %v288_v37 = vld [vmem:[%s1693_s0 + $0x10] sm:$0xff]  ;;  %v289_v38 = vld [vmem:[%s1693_s0 + $0x18] sm:$0xff]  ;;  %v1276_v41 = vld [vmem:[%s1699_s6 + $0x44] ss:$8 sps:$4 sm:$0xff]  }
  0x34   :  { %1152 = vmatprep.subr.bf16.mxu0 %v1254_v9  ;;  %v82_v42 = vld [vmem:[%s1694_s1 + $0x20] sm:$0xff]  ;;  %v84_v43 = vld [vmem:[%s1694_s1 + $0x30] sm:$0xff] }
  0x35   :  { %611 = vmatpush1.bf16.msra.mxu1 %v1269_v25  ;;  %1243 = vset.pattern.permute.xlu1 %v1390_v27  ;;  %v1278_v44 = vld [vmem:[%s1699_s6 + $0x40] ss:$8 sps:$4 sm:$0xff]   ;;  %v1279_v45 = vld [vmem:[%s1699_s6 + $0x54] ss:$8 sps:$4 sm:$0xff]   ;;  %v88_v46 = vpack.c.bf16 %v84_v43, %v82_v42  ;;  %v1281_v47 = vld [vmem:[%s1699_s6 + $0x50] ss:$8 sps:$4 sm:$0xff]  }
  0x36   :  { %354 = vperm.xlu1 %1243, %v287_v20   ;;  %612 = vmatprep.subr.bf16.mxu1 %v1270_v28  ;;  %v1282_v48 = vld [vmem:[%s1699_s6 + $0x64] ss:$8 sps:$4 sm:$0xff]   ;;  %v1284_v49 = vld [vmem:[%s1699_s6 + $0x60] ss:$8 sps:$4 sm:$0xff]   ;;  %v1285_v50 = vld [vmem:[%s1699_s6 + $0x74] ss:$8 sps:$4 sm:$0xff]  }
  0x37   :  { %1153 = vmatpush3.bf16.msra.mxu0 %v1255_v10  ;;  %1242 = vset.pattern.permute.xlu0 %v1389_v2  ;;  %v1287_v51 = vld [vmem:[%s1699_s6 + $0x70] ss:$8 sps:$4 sm:$0xff]   ;;  %v1288_v52 = vld [vmem:[%s1699_s6 + $0x84] ss:$8 sps:$4 sm:$0xff]   ;;  %v1290_v53 = vld [vmem:[%s1699_s6 + $0x80] ss:$8 sps:$4 sm:$0xff]  }
  0x38   :  { %1154 = vmatprep.subr.bf16.mxu0 %v1256_v11  ;;  %298 = vperm.xlu0 %1242, %v287_v20   ;;  %v1291_v54 = vld [vmem:[%s1699_s6 + $0x94] ss:$8 sps:$4 sm:$0xff]   ;;  %v1293_v55 = vld [vmem:[%s1699_s6 + $0x90] ss:$8 sps:$4 sm:$0xff]   ;;  %v1294_v56 = vld [vmem:[%s1699_s6 + $0xa4] ss:$8 sps:$4 sm:$0xff]  }
  0x39   :  { %613 = vmatpush1.bf16.msra.mxu1 %v1272_v34  ;;  %v1296_v57 = vld [vmem:[%s1699_s6 + $0xa0] ss:$8 sps:$4 sm:$0xff]   ;;  %v1297_v58 = vld [vmem:[%s1699_s6 + $0xb4] ss:$8 sps:$4 sm:$0xff]   ;;  %v1299_v59 = vld [vmem:[%s1699_s6 + $0xb0] ss:$8 sps:$4 sm:$0xff]  }
  0x3a   :  { %1244 = vset.pattern.permute.xlu1 %v1389_v2  ;;  %614 = vmatprep.subr.bf16.mxu1 %v1273_v35  ;;  %v1300_v60 = vld [vmem:[%s1699_s6 + $0xc4] ss:$8 sps:$4 sm:$0xff]   ;;  %v1302_v61 = vld [vmem:[%s1699_s6 + $0xc0] ss:$8 sps:$4 sm:$0xff]   ;;  %v1303_v62 = vld [vmem:[%s1699_s6 + $0xd4] ss:$8 sps:$4 sm:$0xff]  }
  0x3b   :  { %1155 = vmatpush3.bf16.msra.mxu0 %v1257_v12  ;;  %303 = vperm.xlu1 %1244, %v288_v37   ;;  %v1305_v63 = vld [vmem:[%s1699_s6 + $0xd0] ss:$8 sps:$4 sm:$0xff]   ;;  %v1306_v0 = vld [vmem:[%s1699_s6 + $0xe4] ss:$8 sps:$4 sm:$0xff]   ;;  %v1309_v2 = vld [vmem:[%s1699_s6 + $0xf4] ss:$8 sps:$4 sm:$0xff]  }
  0x3c   :  { %1156 = vmatprep.subr.bf16.mxu0 %v1258_v13  ;;  %308 = vperm.xlu0 %1242, %v289_v38   ;;  %v1311_v3 = vld [vmem:[%s1699_s6 + $0xf0] ss:$8 sps:$4 sm:$0xff]   ;;  %v1312_v4 = vld [vmem:[#allocation5 + $0x40] sm:$0xff]   ;;  %v1082_v21 = vld [vmem:[%s1697_s4] ss:$0 sm:$0xff] }
  0x3d   :  { %615 = vmatpush1.bf16.msra.mxu1 %v1275_v40  ;;  %v1313_v5 = vld [vmem:[#allocation5] sm:$0xff]   ;;  %v1314_v6 = vld [vmem:[#allocation5 + $0x48] sm:$0xff]   ;;  %v1316_v8 = vld [vmem:[#allocation5 + $0x50] sm:$0xff]  }
  0x3e   :  { %616 = vmatprep.subr.bf16.mxu1 %v1276_v41  ;;  %v1315_v7 = vld [vmem:[#allocation5 + $0x8] sm:$0xff]   ;;  %v1317_v9 = vld [vmem:[#allocation5 + $0x10] sm:$0xff]   ;;  %v1318_v10 = vld [vmem:[#allocation5 + $0x58] sm:$0xff]  }
  0x3f   :  { %1157 = vmatpush3.bf16.msra.mxu0 %v1259_v18  ;;  %1245 = vset.pattern.permute.xlu1 %v1388_v1  ;;  %v1308_v1 = vld [vmem:[%s1699_s6 + $0xe0] ss:$8 sps:$4 sm:$0xff]  }
  0x40   :  { %1158 = vmatprep.subr.bf16.mxu0 %v1260_v19  ;;  %329 = vperm.xlu1 %1245, %v288_v37   ;;  %v1319_v11 = vld [vmem:[#allocation5 + $0x18] sm:$0xff]   ;;  %v1320_v12 = vld [vmem:[#allocation5 + $0x60] sm:$0xff]  }
  0x41   :  { %1246 = vset.pattern.permute.xlu0 %v1390_v27  ;;  %617 = vmatpush1.bf16.msra.mxu1 %v1278_v44  ;;  %v1321_v13 = vld [vmem:[#allocation5 + $0x20] sm:$0xff]  }
  0x42   :  { %358 = vperm.xlu0 %1246, %v288_v37   ;;  %618 = vmatprep.subr.bf16.mxu1 %v1279_v45  ;;  %v1083_v20 = vld [vmem:[%s1697_s4 + $0x1] ss:$0 sm:$0xff]  ;;  %v1084_v28 = vld [vmem:[%s1697_s4 + $0x2] ss:$0 sm:$0xff]  ;;  %v1085_v37 = vld [vmem:[%s1698_s5] ss:$0 sm:$0xff] }
  0x43   :  { %1159 = vmatpush3.bf16.msra.mxu0 %v1261_v24 }
  0x44   :  { %1160 = vmatprep.subr.bf16.mxu0 %v1262_v26  ;;  %333 = vperm.xlu1 %1245, %v289_v38  }
  0x45   :  { %619 = vmatpush1.bf16.msra.mxu1 %v1281_v47 }
  0x46   :  { %620 = vmatprep.subr.bf16.mxu1 %v1282_v48 }
  0x47   :  { %1161 = vmatpush3.bf16.msra.mxu0 %v1263_v29 }
  0x48   :  { %1247 = vset.pattern.permute.xlu1 %v1390_v27  ;;  %1174 = vmatprep.subr.bf16.mxu0 %v1312_v4 }
  0x49   :  { %362 = vperm.xlu1 %1247, %v289_v38   ;;  %621 = vmatpush1.bf16.msra.mxu1 %v1284_v49 }
  0x4a   :  { %258 = vmatmul.mubr.bf16.vlgmr.msra.gmra.mrb[0].mxu0 %v86_v36  ;;  %622 = vmatprep.subr.bf16.mxu1 %v1285_v50 }
  0x4b   :  { %265 = vmatprep.mubr.bf16.mxu0 %v89_v39  ;;  %1175 = vmatpush3.bf16.msra.mxu0 %v1313_v5 }
  0x4c   :  { %1176 = vmatprep.subr.bf16.mxu0 %v1314_v6 }
  0x4d   :  { %623 = vmatpush1.bf16.msra.mxu1 %v1287_v51  ;;  %v1065_v51 = vld [vmem:[%s1696_s3] ss:$0 sm:$0xff] }
  0x4e   :  { %624 = vmatprep.subr.bf16.mxu1 %v1288_v52 }
  0x4f   :  { %1177 = vmatpush3.bf16.msra.mxu0 %v1315_v7 }
  0x50   :  { %1178 = vmatprep.subr.bf16.mxu0 %v1316_v8 }
  0x51   :  { %625 = vmatpush1.bf16.msra.mxu1 %v1290_v53 }
  0x52   :  { %266 = vmatmul.mubr.bf16.gmra.mrb[4].mxu0 %v88_v46  ;;  %626 = vmatprep.subr.bf16.mxu1 %v1291_v54 }
  0x53   :  { %1179 = vmatpush3.bf16.msra.mxu0 %v1317_v9 }
  0x54   :  { %1180 = vmatprep.subr.bf16.mxu0 %v1318_v10 }
  0x55   :  { %627 = vmatpush1.bf16.msra.mxu1 %v1293_v55 }
  0x56   :  { %628 = vmatprep.subr.bf16.mxu1 %v1294_v56 }
  0x57   :  { %1181 = vmatpush3.bf16.msra.mxu0 %v1319_v11 }
  0x58   :  { %1182 = vmatprep.subr.bf16.mxu0 %v1320_v12 }
  0x59   :  { %629 = vmatpush1.bf16.msra.mxu1 %v1296_v57 }
  0x5a   :  { %630 = vmatprep.subr.bf16.mxu1 %v1297_v58 }
  0x5b   :  { %1183 = vmatpush3.bf16.msra.mxu0 %v1321_v13 }
  0x5d   :  { %631 = vmatpush1.bf16.msra.mxu1 %v1299_v59 }
  0x5e   :  { %632 = vmatprep.subr.bf16.mxu1 %v1300_v60 }
  0x61   :  { %633 = vmatpush1.bf16.msra.mxu1 %v1302_v61 }
  0x62   :  { %634 = vmatprep.subr.bf16.mxu1 %v1303_v62 }
  0x65   :  { %635 = vmatpush1.bf16.msra.mxu1 %v1305_v63 }
  0x66   :  { %636 = vmatprep.subr.bf16.mxu1 %v1306_v0 }
  0x69   :  { %637 = vmatpush1.bf16.msra.mxu1 %v1308_v1 }
  0x6a   :  { %638 = vmatprep.subr.bf16.mxu1 %v1309_v2 }
  0x6d   :  { %639 = vmatpush1.bf16.msra.mxu1 %v1311_v3 }
  0xac   :  { %v322_v14 = vpop.permute.xlu1 %321  ;;  %v294_v16 = vpop.permute.xlu0 %293 }
  0xad   :  { %v340_v24 = vmul.f32 %v1083_v20, %v322_v14  ;;  %v315_v25 = vmul.f32 %v1082_v21, %v294_v16 }
  0xaf   :  { %v344_v29 = vadd.f32 %v340_v24, %v315_v25 }
  0xb0   :  { %v326_v15 = vpop.permute.xlu1 %325 }
  0xb1   :  { %v341_v26 = vmul.f32 %v1083_v20, %v326_v15 }
  0xb2   :  { %v351_v18 = vpop.permute.xlu0 %350 }
  0xb3   :  { %v369_v30 = vmul.f32 %v1084_v28, %v351_v18 }
  0xb5   :  { %v355_v17 = vpop.permute.xlu1 %354  ;;  %v373_v35 = vadd.f32 %v369_v30, %v344_v29  ;;  %v1324_v29 = vld [vmem:[#allocation5 + $0x70] sm:$0xff]  }
  0xb6   :  { %v370_v31 = vmul.f32 %v1084_v28, %v355_v17  ;;  %v1325_v30 = vld [vmem:[#allocation5 + $0x30] sm:$0xff]  }
  0xb7   :  { %v299_v22 = vpop.permute.xlu0 %298  ;;  %v384_v44 = vadd.f32 %v1085_v37, %v373_v35 }
  0xb8   :  { %v316_v27 = vmul.f32 %v1082_v21, %v299_v22 }
  0xb9   :  { %v392_v58 = vmul.f32 0.01, %v384_v44  ;;  %vm388_vm0 = vcmp.ge.f32.partialorder %v384_v44, 0.0 }
  0xba   :  { %v304_v19 = vpop.permute.xlu1 %303  ;;  %v345_v32 = vadd.f32 %v341_v26, %v316_v27  ;;  %v1322_v27 = vld [vmem:[#allocation5 + $0x68] sm:$0xff]  }
  0xbb   :  { %v309_v34 = vpop.permute.xlu0 %308  ;;  %v317_v38 = vmul.f32 %v1082_v21, %v304_v19  ;;  %v396_v5 = vsel %vm388_vm0, %v384_v44, %v392_v58  ;;  %1184 = vmatprep.subr.bf16.mxu0 %v1322_v27 }
  0xbc   :  { %v374_v36 = vadd.f32 %v370_v31, %v345_v32  ;;  %v318_v41 = vmul.f32 %v1082_v21, %v309_v34  ;;  %v1326_v31 = vld [vmem:[#allocation5 + $0x78] sm:$0xff]   ;;  %v438_v34 = vlaneseq }
  0xbd   :  { %v1327_v32 = vld [vmem:[#allocation5 + $0x38] sm:$0xff]  }
  0xbe   :  { %v385_v45 = vadd.f32 %v1085_v37, %v374_v36  ;;  %v439_v35 = vshrl.u32 %v438_v34, 7 }
  0xbf   :  { %v330_v23 = vpop.permute.xlu1 %329 }
  0xc0   :  { %v342_v39 = vmul.f32 %v1083_v20, %v330_v23  ;;  %v393_v61 = vmul.f32 0.01, %v385_v45  ;;  %vm389_vm1 = vcmp.ge.f32.partialorder %v385_v45, 0.0  ;;  %v440_v36 = vsub.s32 0, %v439_v35 }
  0xc1   :  { %v359_v43 = vpop.permute.xlu0 %358 }
  0xc2   :  { %v346_v47 = vadd.f32 %v342_v39, %v317_v38  ;;  %v371_v50 = vmul.f32 %v1084_v28, %v359_v43  ;;  %v397_v6 = vsel %vm389_vm1, %v385_v45, %v393_v61  ;;  %v444_v38 = vsub.s32 1, %v439_v35 }
  0xc3   :  { %v334_v33 = vpop.permute.xlu1 %333  ;;  %v400_v15 = vpack.c.bf16 %v397_v6, %v396_v5 }
  0xc4   :  { %v343_v40 = vmul.f32 %v1083_v20, %v334_v33  ;;  %v375_v60 = vadd.f32 %v371_v50, %v346_v47  ;;  %v1328_v33 = vld [vmem:[%s1703_s10] sm:$0xff]  }
  0xc6   :  { %v347_v48 = vadd.f32 %v343_v40, %v318_v41  ;;  %v386_v3 = vadd.f32 %v1085_v37, %v375_v60 }
  0xc8   :  { %v363_v42 = vpop.permute.xlu1 %362  ;;  %v394_v17 = vmul.f32 0.01, %v386_v3  ;;  %vm390_vm4 = vcmp.ge.f32.partialorder %v386_v3, 0.0 }
  0xc9   :  { %v372_v49 = vmul.f32 %v1084_v28, %v363_v42  ;;  %v1323_v28 = vld [vmem:[#allocation5 + $0x28] sm:$0xff]  }
  0xca   :  { %v398_v21 = vsel %vm390_vm4, %v386_v3, %v394_v17  ;;  %1185 = vmatpush3.bf16.msra.mxu0 %v1323_v28  ;;  %v1333_v17 = vld [vmem:[%s1703_s10 + $0x28] sm:$0xff]  }
  0xcb   :  { %v376_v59 = vadd.f32 %v372_v49, %v347_v48  ;;  %1186 = vmatprep.subr.bf16.mxu0 %v1324_v29 }
  0xcd   :  { %v387_v2 = vadd.f32 %v1085_v37, %v376_v59  ;;  %v436_v37 = vld [vmem:[%s1700_s7] sm:$0x3] }
  0xce   :  { %1187 = vmatpush3.bf16.msra.mxu0 %v1325_v30  ;;  %v441_v39 = vrot.slane %v436_v37, %v440_v36  ;;  %v445_v40 = vrot.slane %v436_v37, %v444_v38 }
  0xcf   :  { %v395_v16 = vmul.f32 0.01, %v387_v2  ;;  %vm391_vm5 = vcmp.ge.f32.partialorder %v387_v2, 0.0  ;;  %1188 = vmatprep.subr.bf16.mxu0 %v1326_v31 }
  0xd1   :  { %v399_v22 = vsel %vm391_vm5, %v387_v2, %v395_v16  ;;  %v1332_v16 = vld [vmem:[%s1703_s10 + $0x20] sm:$0xff]  }
  0xd2   :  { %v401_v26 = vpack.c.bf16 %v399_v22, %v398_v21  ;;  %1189 = vmatpush3.bf16.msra.mxu0 %v1327_v32  ;;  %v1118_v21 = vld [vmem:[%s1702_s9] ss:$0 sm:$0xff] }
  0xd3   :  { %1212 = vmatprep.subr.bf16.mxu0 %v1328_v33 }
 0x11d   :  { %v1162_v46 = vpop.f32.mrb[0].mxu0 }
 0x11e   :  { %v1163_v52 = vpop.f32.mrb[1].mxu0 }
 0x11f   :  { %v1164_v53 = vadd.f32 %v1163_v52, %v1162_v46  ;;  %v1165_v54 = vpop.f32.mrb[2].mxu0 }
 0x120   :  { %v1166_v55 = vpop.f32.mrb[3].mxu0 }
 0x121   :  { %v260_v56 = vadd.f32 %v1164_v53, %v1065_v51  ;;  %v1167_v57 = vadd.f32 %v1166_v55, %v1165_v54 }
 0x123   :  { %v263_v62 = vadd.f32 %v1167_v57, %v1065_v51  ;;  %v278_v63 = vmul.f32 0.01, %v260_v56  ;;  %vm274_vm2 = vcmp.ge.f32.partialorder %v260_v56, 0.0 }
 0x125   :  { %v1168_v0 = vpop.f32.mrb[4].mxu0  ;;  %vm275_vm3 = vcmp.ge.f32.partialorder %v263_v62, 0.0  ;;  %v279_v1 = vmul.f32 0.01, %v263_v62  ;;  %v282_v9 = vsel %vm274_vm2, %v260_v56, %v278_v63 }
 0x126   :  { %v1169_v4 = vpop.f32.mrb[5].mxu0 }
 0x127   :  { %v1170_v7 = vadd.f32 %v1169_v4, %v1168_v0  ;;  %v1171_v8 = vpop.f32.mrb[6].mxu0  ;;  %v283_v10 = vsel %vm275_vm3, %v263_v62, %v279_v1  ;;  %v1329_v0 = vld [vmem:[%s1703_s10 + $0x8] sm:$0xff]  }
 0x128   :  { %v1172_v11 = vpop.f32.mrb[7].mxu0  ;;  %v402_v12 = vpack.c.bf16 %v283_v10, %v282_v9 }
 0x129   :  { %v268_v13 = vadd.f32 %v1170_v7, %v1065_v51  ;;  %v1173_v14 = vadd.f32 %v1172_v11, %v1171_v8  ;;  %v1330_v8 = vld [vmem:[%s1703_s10 + $0x10] sm:$0xff]  }
 0x12a   :  { %640 = vmatprep.mubr.bf16.mxu1 %v402_v12 }
 0x12b   :  { %v280_v18 = vmul.f32 0.01, %v268_v13  ;;  %v271_v19 = vadd.f32 %v1173_v14, %v1065_v51  ;;  %641 = vmatmul.mubr.bf16.vlgmr.msra.gmra.mrb[0].mxu1 %v400_v15  ;;  %vm276_vm6 = vcmp.ge.f32.partialorder %v268_v13, 0.0  ;;  %v1331_v15 = vld [vmem:[%s1703_s10 + $0x18] sm:$0xff]  }
 0x12d   :  { %vm277_vm7 = vcmp.ge.f32.partialorder %v271_v19, 0.0  ;;  %v281_v20 = vmul.f32 0.01, %v271_v19  ;;  %v284_v23 = vsel %vm276_vm6, %v268_v13, %v280_v18  ;;  %v1334_v18 = vld [vmem:[%s1703_s10 + $0x30] sm:$0xff]  }
 0x12f   :  { %v285_v24 = vsel %vm277_vm7, %v271_v19, %v281_v20  ;;  %v1335_v19 = vld [vmem:[%s1703_s10 + $0x38] sm:$0xff]  }
 0x130   :  { %v403_v25 = vpack.c.bf16 %v285_v24, %v284_v23 }
 0x132   :  { %650 = vmatprep.mubr.bf16.mxu1 %v403_v25 }
 0x133   :  { %651 = vmatmul.mubr.bf16.gmra.mrb[4].mxu1 %v401_v26 }
 0x1fe   :  { %v642_v41 = vpop.f32.mrb[0].mxu1 }
 0x1ff   :  { %v643_v42 = vadd.f32 %v642_v41, %v441_v39  ;;  %v644_v43 = vpop.f32.mrb[1].mxu1 }
 0x200   :  { %v645_v44 = vadd.f32 %v644_v43, %v445_v40  ;;  %v646_v45 = vpop.f32.mrb[2].mxu1 }
 0x201   :  { %v669_v46 = vmul.f32 0.01, %v643_v42  ;;  %v647_v47 = vadd.f32 %v646_v45, %v441_v39  ;;  %v648_v48 = vpop.f32.mrb[3].mxu1  ;;  %vm661_vm8 = vcmp.ge.f32.partialorder %v643_v42, 0.0 }
 0x202   :  { %v670_v49 = vmul.f32 0.01, %v645_v44  ;;  %v649_v50 = vadd.f32 %v648_v48, %v445_v40  ;;  %vm662_vm9 = vcmp.ge.f32.partialorder %v645_v44, 0.0 }
 0x203   :  { %vm663_vm10 = vcmp.ge.f32.partialorder %v647_v47, 0.0  ;;  %v671_v51 = vmul.f32 0.01, %v647_v47  ;;  %v677_v53 = vsel %vm661_vm8, %v643_v42, %v669_v46  ;;  %vm1030_vm8 = vcmask 523264  }
 0x204   :  { %vm664_vm11 = vcmp.ge.f32.partialorder %v649_v50, 0.0  ;;  %v672_v52 = vmul.f32 0.01, %v649_v50  ;;  %v678_v57 = vsel %vm662_vm9, %v645_v44, %v670_v49  ;;  %vm1054_vm9 = vcmask 7168  }
 0x205   :  { %v679_v54 = vsel %vm663_vm10, %v647_v47, %v671_v51  ;;  %v1135_v47 = vld [vmem:[%s1704_s11] ss:$0 sm:$0xff] }
 0x206   :  { %v685_v55 = vpack.c.bf16 %v679_v54, %v677_v53  ;;  %v652_v56 = vpop.f32.mrb[4].mxu1  ;;  %v680_v58 = vsel %vm664_vm11, %v649_v50, %v672_v52 }
 0x207   :  { %v653_v59 = vadd.f32 %v652_v56, %v441_v39  ;;  %v654_v60 = vpop.f32.mrb[5].mxu1  ;;  %v686_v61 = vpack.c.bf16 %v680_v58, %v678_v57 }
 0x208   :  { %v655_v62 = vadd.f32 %v654_v60, %v445_v40  ;;  %v656_v63 = vpop.f32.mrb[6].mxu1 }
 0x209   :  { %v673_v1 = vmul.f32 0.01, %v653_v59  ;;  %v657_v2 = vadd.f32 %v656_v63, %v441_v39  ;;  %v658_v3 = vpop.f32.mrb[7].mxu1  ;;  %856 = vmatprep.mubr.bf16.mxu0 %v686_v61  ;;  %vm665_vm12 = vcmp.ge.f32.partialorder %v653_v59, 0.0 }
 0x20a   :  { %v674_v4 = vmul.f32 0.01, %v655_v62  ;;  %v659_v5 = vadd.f32 %v658_v3, %v445_v40  ;;  %857 = vmatmul.mubr.bf16.vlgmr.msra.gmra.mrb[8].mxu0 %v685_v55  ;;  %vm666_vm13 = vcmp.ge.f32.partialorder %v655_v62, 0.0  ;;  %v1144_v55 = vld [vmem:[%s1705_s12] ss:$0 sm:$0xff] }
 0x20b   :  { %vm667_vm14 = vcmp.ge.f32.partialorder %v657_v2, 0.0  ;;  %v675_v6 = vmul.f32 0.01, %v657_v2  ;;  %1213 = vmatpush3.bf16.msra.mxu0 %v1328_v33  ;;  %v681_v9 = vsel %vm665_vm12, %v653_v59, %v673_v1 }
 0x20c   :  { %vm668_vm15 = vcmp.ge.f32.partialorder %v659_v5, 0.0  ;;  %v676_v7 = vmul.f32 0.01, %v659_v5  ;;  %1214 = vmatprep.subr.bf16.mxu0 %v1329_v0  ;;  %v682_v11 = vsel %vm666_vm13, %v655_v62, %v674_v4 }
 0x20d   :  { %v683_v10 = vsel %vm667_vm14, %v657_v2, %v675_v6 }
 0x20e   :  { %v684_v12 = vsel %vm668_vm15, %v659_v5, %v676_v7  ;;  %v687_v13 = vpack.c.bf16 %v683_v10, %v681_v9  ;;  %v1145_v9 = vld [vmem:[#allocation2] ss:$0 sm:$0xff] }
 0x20f   :  { %v688_v14 = vpack.c.bf16 %v684_v12, %v682_v11  ;;  %1215 = vmatpush3.bf16.msra.mxu0 %v1329_v0 }
 0x210   :  { %1216 = vmatprep.subr.bf16.mxu0 %v1330_v8 }
 0x211   :  { %864 = vmatprep.mubr.bf16.mxu0 %v688_v14 }
 0x212   :  { %865 = vmatmul.mubr.bf16.gmra.mrb[12].mxu0 %v687_v13 }
 0x213   :  { %1217 = vmatpush3.bf16.msra.mxu0 %v1330_v8 }
 0x214   :  { %1218 = vmatprep.subr.bf16.mxu0 %v1331_v15 }
 0x217   :  { %1219 = vmatpush3.bf16.msra.mxu0 %v1331_v15 }
 0x218   :  { %1220 = vmatprep.subr.bf16.mxu0 %v1332_v16 }
 0x21b   :  { %1221 = vmatpush3.bf16.msra.mxu0 %v1332_v16 }
 0x21c   :  { %1222 = vmatprep.subr.bf16.mxu0 %v1333_v17 }
 0x21f   :  { %1223 = vmatpush3.bf16.msra.mxu0 %v1333_v17 }
 0x220   :  { %1224 = vmatprep.subr.bf16.mxu0 %v1334_v18 }
 0x223   :  { %1225 = vmatpush3.bf16.msra.mxu0 %v1334_v18 }
 0x224   :  { %1226 = vmatprep.subr.bf16.mxu0 %v1335_v19 }
 0x227   :  { %1227 = vmatpush3.bf16.msra.mxu0 %v1335_v19 }
 0x2dd   :  { %v1190_v20 = vpop.f32.mrb[8].mxu0 }
 0x2de   :  { %v1191_v22 = vpop.f32.mrb[9].mxu0 }
 0x2df   :  { %v1192_v23 = vadd.f32 %v1191_v22, %v1190_v20  ;;  %v1193_v24 = vpop.f32.mrb[10].mxu0 }
 0x2e0   :  { %v1194_v25 = vpop.f32.mrb[11].mxu0 }
 0x2e1   :  { %v859_v26 = vadd.f32 %v1192_v23, %v1118_v21  ;;  %v1195_v27 = vadd.f32 %v1194_v25, %v1193_v24 }
 0x2e3   :  { %v877_v28 = vmul.f32 0.01, %v859_v26  ;;  %v862_v29 = vadd.f32 %v1195_v27, %v1118_v21  ;;  %vm873_vm0 = vcmp.ge.f32.partialorder %v859_v26, 0.0 }
 0x2e5   :  { %vm874_vm1 = vcmp.ge.f32.partialorder %v862_v29, 0.0  ;;  %v878_v30 = vmul.f32 0.01, %v862_v29  ;;  %v1196_v31 = vpop.f32.mrb[12].mxu0  ;;  %v881_v35 = vsel %vm873_vm0, %v859_v26, %v877_v28 }
 0x2e6   :  { %v1197_v32 = vpop.f32.mrb[13].mxu0 }
 0x2e7   :  { %v1198_v33 = vadd.f32 %v1197_v32, %v1196_v31  ;;  %v1199_v34 = vpop.f32.mrb[14].mxu0  ;;  %v882_v36 = vsel %vm874_vm1, %v862_v29, %v878_v30 }
 0x2e8   :  { %v1200_v37 = vpop.f32.mrb[15].mxu0  ;;  %v885_v38 = vpack.c.bf16 %v882_v36, %v881_v35 }
 0x2e9   :  { %v867_v39 = vadd.f32 %v1198_v33, %v1118_v21  ;;  %v1201_v40 = vadd.f32 %v1200_v37, %v1199_v34 }
 0x2ea   :  { %1228 = vmatprep.mubr.bf16.mxu0 %v885_v38 }
 0x2eb   :  { %v879_v41 = vmul.f32 0.01, %v867_v39  ;;  %v870_v42 = vadd.f32 %v1201_v40, %v1118_v21  ;;  %vm875_vm2 = vcmp.ge.f32.partialorder %v867_v39, 0.0 }
 0x2ed   :  { %vm876_vm3 = vcmp.ge.f32.partialorder %v870_v42, 0.0  ;;  %v880_v43 = vmul.f32 0.01, %v870_v42  ;;  %v883_v44 = vsel %vm875_vm2, %v867_v39, %v879_v41 }
 0x2ef   :  { %v884_v45 = vsel %vm876_vm3, %v870_v42, %v880_v43 }
 0x2f0   :  { %v886_v46 = vpack.c.bf16 %v884_v45, %v883_v44 }
 0x2f2   :  { %1229 = vmatmul.mubr.bf16.vlgmr.msra.gmra.mrb[16].mxu0 %v886_v46 }
 0x3c5   :  { %v1230_v48 = vpop.f32.mrb[16].mxu0 }
 0x3c6   :  { %v1001_v49 = vadd.f32 %v1230_v48, %v1135_v47  ;;  %v992_v50 = vpop.f32.mrb[17].mxu0 }
 0x3c7   :  { %v993_v51 = vadd.f32 %v1135_v47, %v992_v50  ;;  %v1231_v52 = vpop.f32.mrb[18].mxu0 }
 0x3c8   :  { %v1004_v53 = vadd.f32 %v1231_v52, %v1135_v47  ;;  %v995_v54 = vpop.f32.mrb[19].mxu0  ;;  %v1013_v56 = vmul.f32 0.01, %v1001_v49  ;;  %vm1009_vm5 = vcmp.ge.f32.partialorder %v1001_v49, 0.0 }
 0x3c9   :  { %vm1007_vm4 = vcmp.ge.f32.partialorder %v993_v51, 0.0  ;;  %v1011_v57 = vmul.f32 0.01, %v993_v51  ;;  %v996_v58 = vadd.f32 %v1135_v47, %v995_v54 }
 0x3ca   :  { %vm1010_vm6 = vcmp.ge.f32.partialorder %v1004_v53, 0.0  ;;  %v1014_v59 = vmul.f32 0.01, %v1004_v53  ;;  %v1017_v1 = vsel %vm1009_vm5, %v1001_v49, %v1013_v56 }
 0x3cb   :  { %vm1008_vm7 = vcmp.ge.f32.partialorder %v996_v58, 0.0  ;;  %v1012_v60 = vmul.f32 0.01, %v996_v58  ;;  %v1015_v61 = vsel %vm1007_vm4, %v993_v51, %v1011_v57  ;;  %v1028_v6 = vmul.f32 %v1144_v55, %v1017_v1 }
 0x3cc   :  { %v1026_v62 = vmul.f32 %v1144_v55, %v1015_v61  ;;  %v1018_v63 = vsel %vm1010_vm6, %v1004_v53, %v1014_v59 }
 0x3cd   :  { %v1016_v0 = vsel %vm1008_vm7, %v996_v58, %v1012_v60  ;;  %v1029_v4 = vmul.f32 %v1144_v55, %v1018_v63  ;;  %v1037_v8 = vsel %vm1030_vm8, %v1028_v6, 0.0 }
 0x3ce   :  { %v1031_v2 = vsel %vm1030_vm8, %v1026_v62, 0.0  ;;  %v1027_v3 = vmul.f32 %v1144_v55, %v1016_v0 }
 0x3cf   :  { %1032 = vadd.xlane.f32.xlu1 %v1031_v2  ;;  %v1040_v7 = vsel %vm1030_vm8, %v1029_v4, 0.0 }
 0x3d0   :  { %v1034_v5 = vsel %vm1030_vm8, %v1027_v3, 0.0 }
 0x3d1   :  { %1035 = vadd.xlane.f32.xlu0 %v1034_v5 }
 0x3d3   :  { %1041 = vadd.xlane.f32.xlu1 %v1040_v7 }
 0x3d5   :  { %1038 = vadd.xlane.f32.xlu0 %v1037_v8 }
 0x45c   :  { %v1033_v10 = vpop.xlane.xlu1 %1032 }
 0x45d   :  { %v1050_v11 = vadd.f32 %v1145_v9, %v1033_v10 }
 0x45e   :  { %v1036_v12 = vpop.xlane.xlu0 %1035 }
 0x45f   :  { %1055 = vst.msk [vmem:[%s1707_s14] sm:$0xff] %vm1054_vm9, %v1050_v11  ;;  %v1051_v13 = vadd.f32 %v1145_v9, %v1036_v12 }
 0x460   :  { %v1042_v14 = vpop.xlane.xlu1 %1041 }
 0x461   :  { %1056 = vst.msk [vmem:[%s1707_s14 + $0x8] sm:$0xff] %vm1054_vm9, %v1051_v13  ;;  %v1053_v15 = vadd.f32 %v1145_v9, %v1042_v14 }
 0x462   :  { %v1039_v16 = vpop.xlane.xlu0 %1038 }
 0x463   :  { %1058 = vst.msk [vmem:[%s1707_s14 + $0x18] sm:$0xff] %vm1054_vm9, %v1053_v15  ;;  %v1052_v17 = vadd.f32 %v1145_v9, %v1039_v16 }
 0x465   :  { %1057 = vst.msk [vmem:[%s1707_s14 + $0x10] sm:$0xff] %vm1054_vm9, %v1052_v17 }
 0x466   :  { %1063 = vsyncpa [#allocation4], 1 }
 0x467   :  { %1064 = vsyncpa [#allocation6], 1 }

</bundles_post_ra>
